<compile_context>
chip_gen: v7x
topology: tpu7x:2x2x1
jax: 0.10.0
libtpu: 0.0.40
codegen_flags: <defaults>
</compile_context>

<pallas_src>
import math
import functools

import jax
import jax.numpy as jnp
from jax.experimental import pallas as pl
from jax.experimental.pallas import tpu as pltpu


# ----------------------------------------------------------------------------
# Parameter setup (plain JAX): the sin/cos positional-encoding table.
# ----------------------------------------------------------------------------
def make_pe_table(d_model: int, max_len: int = 5000) -> jnp.ndarray:
    position = jnp.arange(max_len, dtype=jnp.float32)[:, None]            # [max_len, 1]
    div_term = jnp.exp(
        jnp.arange(0, d_model, 2, dtype=jnp.float32) * (-math.log(10000.0) / d_model)
    )                                                                     # [d_model/2]
    pe = jnp.zeros((max_len, 1, d_model), dtype=jnp.float32)
    pe = pe.at[:, 0, 0::2].set(jnp.sin(position * div_term))
    pe = pe.at[:, 0, 1::2].set(jnp.cos(position * div_term))
    return pe


# ----------------------------------------------------------------------------
# Pallas kernels (lane-dense layout: x/out blocks are [tile_s, B*D],
# pe block is [tile_s, D]; the kernel walks batch slices - no concat temporary).
# ----------------------------------------------------------------------------
def _pe_add_kernel(x_ref, pe_ref, o_ref, *, batch: int, d_model: int):
    pe_t = pe_ref[...]                                     # (tile_s, D), x.dtype
    for b in range(batch):                                 # static, small trip count
        sl = slice(b * d_model, (b + 1) * d_model)
        o_ref[:, sl] = (x_ref[:, sl] + pe_t).astype(o_ref.dtype)


def _pe_add_dropout_kernel(seed_ref, x_ref, pe_ref, o_ref, *,
                           p: float, batch: int, d_model: int,
                           tile_rows: int, total_cols: int, use_hw_prng: bool):
    pe_t = pe_ref[...]                                     # (tile_s, D), x.dtype
    rows, cols = x_ref.shape

    # keep iff bits >= p * 2^32  ->  P(keep) = 1 - p (raw integer threshold compare)
    threshold = jnp.uint32(min(int(round(p * 2.0 ** 32)), 2 ** 32 - 1))

    if use_hw_prng:
        # Hardware PRNG: one stream per grid step (grid-order independent).
        pltpu.prng_seed(seed_ref[0], pl.program_id(0))
        bits = pltpu.bitcast(pltpu.prng_random_bits((rows, cols)), jnp.uint32)
    else:
        # Fallback (interpret mode / non-TPU): cheap counter-based hash.
        row_off = (pl.program_id(0) * tile_rows).astype(jnp.uint32) * jnp.uint32(total_cols)
        lin = (jax.lax.broadcasted_iota(jnp.int32, (rows, cols), 0).astype(jnp.uint32)
               * jnp.uint32(total_cols)
               + jax.lax.broadcasted_iota(jnp.int32, (rows, cols), 1).astype(jnp.uint32)
               + row_off)
        h = lin ^ (seed_ref[0].astype(jnp.uint32) * jnp.uint32(0x9E3779B1))
        h = h ^ (h >> 16)
        h = h * jnp.uint32(0x85EBCA6B)
        h = h ^ (h >> 13)
        bits = h ^ (h >> 16)

    scale = jnp.asarray(1.0 / (1.0 - p), dtype=x_ref.dtype)
    zero = jnp.asarray(0.0, dtype=x_ref.dtype)
    for b in range(batch):                                 # static, small trip count
        sl = slice(b * d_model, (b + 1) * d_model)
        y = x_ref[:, sl] + pe_t
        keep = bits[:, sl] >= threshold
        o_ref[:, sl] = jnp.where(keep, y * scale, zero).astype(o_ref.dtype)


# ----------------------------------------------------------------------------
# Tiling: sublane-aligned tile near the byte target, but always leaving the
# grid with >= 2 steps (>= 4 for long sequences) so megacore sharding and
# DMA/compute pipelining have work.  Ragged last block is fine (cdiv grid).
# ----------------------------------------------------------------------------
def _choose_tile_s(seq_len: int, row_bytes: int,
                   target_bytes: int, sublane: int) -> int:
    if seq_len <= sublane:
        return seq_len                                     # single tiny (full-dim) block
    min_steps = 4 if seq_len >= 4 * sublane else 2
    cap = max(sublane, (pl.cdiv(seq_len, min_steps) // sublane) * sublane)
    rows_budget = max(sublane, (target_bytes // max(1, row_bytes)) // sublane * sublane)
    return min(cap, rows_budget)


def _generation_block_defaults() -> tuple[int, int]:
    """(target_block_bytes, vmem_limit_bytes) by TPU generation."""
    try:
        kind = jax.devices()[0].device_kind.lower()
    except Exception:
        kind = ""
    if ("v5" in kind) or ("v6" in kind):
        return 8 * 1024 * 1024, 64 * 1024 * 1024           # 128 MiB physical VMEM
    return 4 * 1024 * 1024, 48 * 1024 * 1024               # v7x (64 MiB VMEM) / unknown


# ----------------------------------------------------------------------------
# Wrapper
# ----------------------------------------------------------------------------
def positional_encoding_forward(
    x: jnp.ndarray,
    pe_table: jnp.ndarray,
    *,
    dropout_p: float = 0.1,
    training: bool = False,
    seed: int = 0,
    target_block_bytes: int | None = None,
    vmem_limit_bytes: int | None = None,
    use_hw_prng: bool | None = None,
) -> jnp.ndarray:
    """x: [S, B, D]; pe_table: [max_len, 1, D] float32."""
    S, B, D = x.shape
    assert pe_table.shape[0] >= S and pe_table.shape[-1] == D
    assert S * B * D < 2 ** 32, "fallback dropout hash indexes elements with uint32"

    default_blk, default_vmem = _generation_block_defaults()
    if target_block_bytes is None:
        target_block_bytes = default_blk
    if vmem_limit_bytes is None:
        vmem_limit_bytes = default_vmem
    if use_hw_prng is None:
        use_hw_prng = jax.default_backend() == "tpu"

    # pe in x.dtype (halves pe HBM traffic for bf16); x viewed as lane-dense [S, B*D].
    pe = pe_table[:S, 0, :].astype(x.dtype)                # [S, D]
    x2 = x.reshape(S, B * D)                               # free view for contiguous [S,B,D]
    # NOTE: keep B*D a multiple of 128 for unmasked (fast) stores; correctness
    # does not depend on it.

    itemsize = jnp.dtype(x.dtype).itemsize
    sublane = 16 if itemsize == 2 else 8                   # bf16 needs 16-row sublane tiles
    tile_s = _choose_tile_s(S, B * D * itemsize, target_block_bytes, sublane)
    grid = (pl.cdiv(S, tile_s),)

    x_spec = pl.BlockSpec((tile_s, B * D), lambda i: (i, 0))
    pe_spec = pl.BlockSpec((tile_s, D), lambda i: (i, 0))
    out_spec = pl.BlockSpec((tile_s, B * D), lambda i: (i, 0))
    out_shape = jax.ShapeDtypeStruct((S, B * D), x.dtype)

    compiler_params = pltpu.CompilerParams(
        dimension_semantics=("parallel",),                 # independent tiles -> split over TCs
        vmem_limit_bytes=vmem_limit_bytes,
    )
    # TODO(synk): optionally alias x -> out via input_output_aliases when the
    # caller does not reuse x, to drop one HBM buffer.

    if (not training) or dropout_p == 0.0:
        out2 = pl.pallas_call(
            functools.partial(_pe_add_kernel, batch=B, d_model=D),
            grid=grid,
            in_specs=[x_spec, pe_spec],
            out_specs=out_spec,
            out_shape=out_shape,
            compiler_params=compiler_params,
        )(x2, pe)
    else:
        assert 0.0 < dropout_p < 1.0
        seed_arr = jnp.asarray([seed], dtype=jnp.int32)
        out2 = pl.pallas_call(
            functools.partial(
                _pe_add_dropout_kernel,
                p=float(dropout_p), batch=B, d_model=D,
                tile_rows=tile_s, total_cols=B * D, use_hw_prng=bool(use_hw_prng),
            ),
            grid=grid,
            in_specs=[
                pl.BlockSpec(memory_space=pltpu.MemorySpace.SMEM),  # seed scalar
                x_spec,
                pe_spec,
            ],
            out_specs=out_spec,
            out_shape=out_shape,
            compiler_params=compiler_params,
        )(seed_arr, x2, pe)

    return out2.reshape(S, B, D)


# ----------------------------------------------------------------------------
# Main
# ----------------------------------------------------------------------------
if __name__ == "__main__":
    # seq=20 (exercises multi-step grid + ragged last block), batch=2, d_model=128
    S, B, D = 20, 2, 128
    MAX_LEN = 64

    key = jax.random.PRNGKey(0)
    x = jax.random.normal(key, (S, B, D), dtype=jnp.float32)
    pe_table = make_pe_table(D, max_len=MAX_LEN)

    # --- eval mode (deterministic): y = x + pe[:S] ---------------------------
    y = positional_encoding_forward(x, pe_table, dropout_p=0.1, training=False)
    y = jax.block_until_ready(y)
    y_ref = x + pe_table[:S]
    assert y.shape == (S, B, D)
    assert jnp.allclose(y, y_ref, atol=1e-6), "eval-mode mismatch vs reference"

    # --- training mode (inverted dropout) ------------------------------------
    p = 0.1
    y_tr = positional_encoding_forward(x, pe_table, dropout_p=p, training=True, seed=1234)
    y_tr = jax.block_until_ready(y_tr)
    assert y_tr.shape == (S, B, D)
    # every element is either exactly 0 (dropped) or (x+pe)/(1-p) (kept)
    expected = y_ref / (1.0 - p)
    kept = y_tr != 0.0
    assert jnp.allclose(jnp.where(kept, y_tr, expected), expected, rtol=1e-4, atol=1e-5), \
        "training-mode kept values do not match (x+pe)/(1-p)"
    drop_frac = 1.0 - float(jnp.mean(kept.astype(jnp.float32)))
    assert 0.0 < drop_frac < 0.5, f"implausible dropout fraction {drop_frac}"

    print("KERNEL_OK")
</pallas_src>

<mosaic_0001>
module attributes {stable_mosaic.version = 11 : i64} {
  func.func @_pe_add_kernel(%arg0: i32, %arg1: memref<8x256xf32, #tpu.memory_space<vmem>>, %arg2: memref<8x128xf32, #tpu.memory_space<vmem>>, %arg3: memref<8x256xf32, #tpu.memory_space<vmem>>) attributes {dimension_semantics = [#tpu.dimension_semantics<parallel>], iteration_bounds = array<i64: 3>, scalar_prefetch = 0 : i64, scratch_operands = 0 : i64, tpu.core_type = #tpu.core_type<tc>, window_params = [{transform_indices = @transform_0, window_bounds = array<i64: 8, 256>}, {transform_indices = @transform_1, window_bounds = array<i64: 8, 128>}, {transform_indices = @transform_2, window_bounds = array<i64: 8, 256>}]} {
    %c0 = arith.constant 0 : index
    %c0_0 = arith.constant 0 : index
    %0 = vector.load %arg2[%c0, %c0_0] : memref<8x128xf32, #tpu.memory_space<vmem>>, vector<8x128xf32>
    %c0_1 = arith.constant 0 : index
    %c0_2 = arith.constant 0 : index
    %1 = vector.load %arg1[%c0_1, %c0_2] : memref<8x256xf32, #tpu.memory_space<vmem>>, vector<8x128xf32>
    %2 = arith.addf %1, %0 : vector<8x128xf32>
    %c0_3 = arith.constant 0 : index
    %c0_4 = arith.constant 0 : index
    %3 = vector.load %arg3[%c0_3, %c0_4] : memref<8x256xf32, #tpu.memory_space<vmem>>, vector<8x128xf32>
    tpu.vector_store %arg3[%c0_3, %c0_4], %2 {strides = array<i32>} : memref<8x256xf32, #tpu.memory_space<vmem>>, vector<8x128xf32>,
    %c0_5 = arith.constant 0 : index
    %c128 = arith.constant 128 : index
    %4 = vector.load %arg1[%c0_5, %c128] : memref<8x256xf32, #tpu.memory_space<vmem>>, vector<8x128xf32>
    %5 = arith.addf %4, %0 : vector<8x128xf32>
    %c0_6 = arith.constant 0 : index
    %c128_7 = arith.constant 128 : index
    %6 = vector.load %arg3[%c0_6, %c128_7] : memref<8x256xf32, #tpu.memory_space<vmem>>, vector<8x128xf32>
    tpu.vector_store %arg3[%c0_6, %c128_7], %5 {strides = array<i32>} : memref<8x256xf32, #tpu.memory_space<vmem>>, vector<8x128xf32>,
    return
  }
  func.func @transform_0(%arg0: i32) -> (i32, i32) {
    %c0_i32 = arith.constant 0 : i32
    %c0_i32_0 = arith.constant 0 : i32
    return %arg0, %c0_i32 : i32, i32
  }
  func.func @transform_1(%arg0: i32) -> (i32, i32) {
    %c0_i32 = arith.constant 0 : i32
    %c0_i32_0 = arith.constant 0 : i32
    return %arg0, %c0_i32 : i32, i32
  }
  func.func @transform_2(%arg0: i32) -> (i32, i32) {
    %c0_i32 = arith.constant 0 : i32
    %c0_i32_0 = arith.constant 0 : i32
    return %arg0, %c0_i32 : i32, i32
  }
}

</mosaic_0001>

<bundles_post_ra>
// kernel: tpu_custom_call.1
= control target key start
LH: loop header
LB: loop body
LE: loop exit
PB: predicated region body
PF: predicated region fallthrough
CT: control target
= control target key end

     0   :  { %7 = vsyncpa [#allocation3], 0  ;;  %s734_s0 = inlined_call_operand.hbm [shape: f32[20,256], index: 0, kind: input, shape index: {}]   ;;  %s735_s1 = inlined_call_operand.hbm [shape: f32[20,128], index: 1, kind: input, shape index: {}]   ;;  %s736_s2 = inlined_call_operand.hbm [shape: f32[20,256], index: 2, kind: output, shape index: {}]  }
   0x1   :  { %9 = vsyncpa [#allocation3 + $0x1], 0 }
   0x2   :  { %10 = vsyncpa [#allocation6], 0 }
   0x3   :  { %12 = vsyncpa [#allocation6 + $0x1], 0 }
   0x4   :  { %13 = vsyncpa [#allocation4], 0 }
   0x5   :  { %15 = vsyncpa [#allocation4 + $0x1], 0  ;;  %s532_s9 = smov 0   ;;  %s534_s10 = smov 0  }
   0x6   :  { %s536_s11 = smov 0   ;;  %s538_s12 = smov 0  }
   0x7 LB: > { %s553_s13 = sadd.s32 4294967295, %s512_s12   ;;  %s312_s14 = sadd.s32 4294967294, %s512_s12   ;;  %s512_s12 = sphi %s538_s12, %s754_s12   ;;  %s508_s11 = sphi %s536_s11, %s753_s11   ;;  %s504_s10 = sphi %s534_s10, %s752_s10   ;;  %s500_s9 = sphi %s532_s9, %s751_s9  }
   0x8   : > { %s557_s15 = sadd.s32 1, %s512_s12   ;;  %s28_s16 = sadd.s32 1, %s508_s11 }
   0x9   : > { %s25_s17 = ssub.s32 %s512_s12, %s557_s15  ;;  %p35_p0 = scmp.ne.s32.totalorder %s508_s11, %s504_s10 }
   0xa   : > { %p26_p1 = scmp.eq.s32.totalorder %s25_s17, 0  ;;  %p36_p2 = scmp.eq.s32.totalorder %s512_s12, 0 }
   0xb   : > { %p41_p3 = scmp.ne.s32.totalorder %s504_s10, %s500_s9  ;;  %p42_p4 = scmp.eq.s32.totalorder %s553_s13, 0 }
   0xc   : > { %s569_s18 = scalar_select %p26_p1, %s508_s11, %s28_s16  }
   0xd   : > { %p571_p5 = por %p36_p2, %p35_p0  ;;  %p575_p6 = por %p42_p4, %p41_p3 }
   0xe   : > { %p91_p7 = scmp.eq.s32.totalorder %s553_s13, 2  ;;  %p97_p8 = scmp.eq.s32.totalorder %s312_s14, 2 }
   0xf   : > { %s740_s20 = scalar_select %p575_p6, 1, 0 }
  0x10   : > { %p348_p9 = scmp.lt.s32.totalorder %s512_s12, 3  ;;  %p581_p10 = por %p91_p7, %p35_p0 }
  0x11   : > { %p585_p11 = por %p97_p8, %p41_p3  ;;  %s590_s23 = sand.u32 1, %s508_s11  }
  0x12   : > { %s741_s21 = scalar_select %p581_p10, 1, 0 }
  0x13   : > { %s742_s22 = scalar_select %p585_p11, 1, 0 }
  0x14   : > { %s329_s24 = sshll.u32 %s512_s12, 8  ;;  %s315_s25 = sshll.u32 %s590_s23, 4 }
  0x15   : > { %s597_s28 = scalar_lea.hbm %s734_s0, %s329_s24  ;;  %s121_s29 = scalar_lea.vmem [#allocation2], %s315_s25 }
  0x16   : > { %s129_s30 = sshll.u32 %s121_s29, 4  ;;  %p601_p12 = pnand %p348_p9, %p571_p5  ;;  %s605_s30 = int_to_ptr.vmem [resolvable:$true] %s129_s30 }
  0x17   : > { %s118_s4 = scalar_lea.sflag [#allocation3], %s590_s23  ;;  %s382_s5 = scalar_lea.hbm %s597_s28, 256 }
  0x18   : > { %p383_p1 = scmp.ne.s32.totalorder %s597_s28, %s382_s5  ;;  %p384_p2 = pneg %p601_p12 }
  0x19   : > { %s387_s8 = scalar_lea.hbm %s734_s0, 768  ;;  %p388_p5 = scmp.lt.u32.totalorder %s597_s28, %s734_s0 }
  0x1a   : > { %p385_p3 = pnand %p384_p2, %p383_p1  ;;  %p389_p7 = scmp.lt.u32.totalorder %s387_s8, %s382_s5 }
  0x1b   : > { %p391_p9 = scmp.lt.u32.totalorder %s382_s5, %s597_s28 }
  0x1c   : > { %p386_p4 = pneg %p385_p3  ;;  %p390_p8 = por %p389_p7, %p388_p5 }
  0x1e   : > { %p392_p13 = por %p391_p9, %p390_p8 }
  0x20   : > { %p393_p0 = pnand %p392_p13, %p386_p4 }
  0x22   : > { %396 = shalt.err (!%p393_p0)
}
  0x23   : > { %s397_s17 = scalar_lea.vmem %s605_s30, 256  ;;  %s514_s19 = smov [#allocation2]  }
  0x24   : > { %p398_p1 = scmp.ne.s32.totalorder %s605_s30, %s397_s17  ;;  %s402_s24 = sshll.u32 %s514_s19, 4  ;;  %s403_s24 = int_to_ptr.vmem [resolvable:$false] %s402_s24 }
  0x25   : > { %s404_s25 = scalar_lea.vmem %s403_s24, 512  ;;  %p405_p10 = scmp.lt.s32.totalorder %s605_s30, %s403_s24 }
  0x26   : > { %p400_p3 = pnand %p398_p1, %p384_p2  ;;  %p406_p5 = scmp.lt.s32.totalorder %s404_s25, %s397_s17 }
  0x28   : > { %p401_p11 = pneg %p400_p3  ;;  %p407_p7 = por %p406_p5, %p405_p10 }
  0x2a   : > { %p408_p8 = pnand %p407_p7, %p401_p11 }
  0x2c   : > { %411 = shalt.err (!%p408_p8)
}
  0x2d   : > { %340 = dma.hbm_to_vmem [thread:$0]  (!%p601_p12), %s597_s28, 256, %s605_s30, %s118_s4  }
  0x2e   : > { %p744_p13 = scmp.lt.s32.totalorder %s512_s12, 4  ;;  %p745_p0 = scmp.ge.s32.totalorder %s512_s12, 1 }
  0x2f   : > { %s318_s27 = sshll.u32 %s590_s23, 3  ;;  %s319_s29 = sshll.u32 %s512_s12, 7 }
  0x30   : > { %p639_p4 = pnand %p745_p0, %p744_p13  ;;  %s648_s7 = scalar_lea.hbm %s735_s1, %s319_s29 }
  0x31   : > { %s140_s8 = scalar_lea.vmem [#allocation5], %s318_s27  ;;  %s137_s28 = scalar_lea.sflag [#allocation6], %s590_s23 }
  0x32   : > { %s746_s26 = scalar_select %p639_p4, 1, 0 }
  0x33   : > { %s147_s14 = sshll.u32 %s140_s8, 4  ;;  %s412_s30 = scalar_lea.hbm %s648_s7, 128  ;;  %s148_s14 = int_to_ptr.vmem [resolvable:$true] %s147_s14 }
  0x34   : > { %p413_p10 = scmp.ne.s32.totalorder %s648_s7, %s412_s30  ;;  %s417_s17 = scalar_lea.hbm %s735_s1, 384 }
  0x35   : > { %p418_p1 = scmp.lt.u32.totalorder %s648_s7, %s735_s1  ;;  %p419_p3 = scmp.lt.u32.totalorder %s417_s17, %s412_s30 }
  0x36   : > { %p415_p11 = pnand %p413_p10, %p384_p2  ;;  %p421_p7 = scmp.lt.u32.totalorder %s412_s30, %s648_s7 }
  0x37   : > { %p420_p5 = por %p419_p3, %p418_p1 }
  0x38   : > { %p416_p9 = pneg %p415_p11 }
  0x39   : > { %p422_p8 = por %p421_p7, %p420_p5 }
  0x3b   : > { %p423_p13 = pnand %p422_p8, %p416_p9 }
  0x3d   : > { %426 = shalt.err (!%p423_p13)
}
  0x3e   : > { %s427_s23 = scalar_lea.vmem %s148_s14, 128  ;;  %s515_s25 = smov [#allocation5]  }
  0x3f   : > { %p428_p0 = scmp.ne.s32.totalorder %s148_s14, %s427_s23  ;;  %s432_s27 = sshll.u32 %s515_s25, 4  ;;  %s433_s27 = int_to_ptr.vmem [resolvable:$false] %s432_s27 }
  0x40   : > { %s434_s29 = scalar_lea.vmem %s433_s27, 256  ;;  %p435_p6 = scmp.lt.s32.totalorder %s148_s14, %s433_s27 }
  0x41   : > { %p430_p10 = pnand %p428_p0, %p384_p2  ;;  %p436_p4 = scmp.lt.s32.totalorder %s434_s29, %s427_s23 }
  0x43   : > { %p431_p11 = pneg %p430_p10  ;;  %p437_p1 = por %p436_p4, %p435_p6 }
  0x45   : > { %p438_p3 = pnand %p437_p1, %p431_p11 }
  0x47   : > { %441 = shalt.err (!%p438_p3)
}
  0x48   : > { %343 = dma.hbm_to_vmem [thread:$0]  (!%p601_p12), %s648_s7, 128, %s148_s14, %s137_s28  }
  0x49   : > { %p747_p9 = scmp.ne.s32.totalorder %s746_s26, 0 }
  0x4a   : > { %s673_s5 = sand.u32 (!%p747_p9), 1, %s504_s10   ;;  %p748_p2 = scmp.ne.s32.totalorder (!%p747_p9), %s740_s20, 0 }
  0x4b   : > { %156 = sbr.rel (%p747_p9) target bundleno = 112 (0x70), region = 28  ;;  %s321_s6 = sshll.u32 (!%p747_p9), %s673_s5, 4 }
  0x4c   : > { %s159_s8 = scalar_lea.sflag (!%p747_p9), [#allocation3], %s673_s5  ;;  %s162_s30 = scalar_lea.vmem (!%p747_p9), [#allocation2], %s321_s6 }
  0x52   : > { %487 = dma.done.wait (%p748_p2), %s159_s8, 256  }
  0x53   : > { %489 = vsyncadd (%p748_p2), %s159_s8, 4294967040  ;;  %s322_s3 = sshll.u32 %s673_s5, 3  ;;  %s168_s26 = scalar_lea.sflag [#allocation6], %s673_s5 }
  0x54   : > { %s171_s7 = scalar_lea.vmem [#allocation5], %s322_s3 }
  0x55   : > { %491 = dma.done.wait (%p748_p2), %s168_s26, 128  }
  0x56   : > { %493 = vsyncadd (%p748_p2), %s168_s26, 4294967168  ;;  %s196_s14 = scalar_lea.vmem [#allocation7], %s321_s6  ;;  %s330_s4 = sshll.u32 %s553_s13, 8  ;;  %v197_v0 = vld [vmem:[%s171_s7] sm:$0xff]  ;;  %v201_v2 = vld [vmem:[%s162_s30 + $0x8] sm:$0xff] }
  0x57   : > { %s219_s28 = sshll.u32 %s196_s14, 4  ;;  %v198_v1 = vld [vmem:[%s162_s30] sm:$0xff]  ;;  %v202_v4 = vadd.f32 %v201_v2, %v197_v0  ;;  %s693_s20 = scalar_lea.hbm %s736_s2, %s330_s4  ;;  %s688_s28 = int_to_ptr.vmem [resolvable:$true] %s219_s28 }
  0x58   : > { %v199_v3 = vadd.f32 %v198_v1, %v197_v0  ;;  %s205_s19 = scalar_lea.sflag [#allocation4], %s673_s5  ;;  %s442_s24 = scalar_lea.vmem %s688_s28, 256 }
  0x59   : > { %203 = vst [vmem:[%s196_s14 + $0x8] sm:$0xff] %v202_v4  ;;  %p443_p6 = scmp.ne.s32.totalorder %s688_s28, %s442_s24  ;;  %p749_p12 = scmp.ne.s32.totalorder %s741_s21, 0 }
  0x5a   : > { %200 = vst [vmem:[%s196_s14] sm:$0xff] %v199_v3  ;;  %s516_s13 = smov [#allocation7]  }
  0x5b   : > { %p444_p4 = pnand %p443_p6, %p749_p12  ;;  %s446_s23 = sshll.u32 %s516_s13, 4  ;;  %s447_s23 = int_to_ptr.vmem [resolvable:$false] %s446_s23 }
  0x5c   : > { %s448_s25 = scalar_lea.vmem %s447_s23, 512  ;;  %p449_p7 = scmp.lt.s32.totalorder %s688_s28, %s447_s23 }
  0x5d   : > { %p445_p5 = pneg %p444_p4  ;;  %p450_p8 = scmp.lt.s32.totalorder %s448_s25, %s442_s24 }
  0x5f   : > { %p451_p13 = por %p450_p8, %p449_p7 }
  0x61   : > { %p452_p0 = pnand %p451_p13, %p445_p5 }
  0x63   : > { %455 = shalt.err (!%p452_p0)
}
  0x64   : > { %s456_s27 = scalar_lea.hbm %s693_s20, 256  ;;  %s460_s6 = scalar_lea.hbm %s736_s2, 768 }
  0x65   : > { %p457_p10 = scmp.ne.s32.totalorder %s693_s20, %s456_s27  ;;  %p461_p3 = scmp.lt.u32.totalorder %s693_s20, %s736_s2 }
  0x66   : > { %p462_p9 = scmp.lt.u32.totalorder %s460_s6, %s456_s27  ;;  %p464_p6 = scmp.lt.u32.totalorder %s456_s27, %s693_s20 }
  0x67   : > { %p458_p11 = pnand %p457_p10, %p749_p12 }
  0x68   : > { %p463_p2 = por %p462_p9, %p461_p3 }
  0x69   : > { %p459_p1 = pneg %p458_p11 }
  0x6a   : > { %p465_p4 = por %p464_p6, %p463_p2 }
  0x6c   : > { %p466_p5 = pnand %p465_p4, %p459_p1 }
  0x6e   : > { %469 = shalt.err (!%p466_p5)
}
  0x6f   : > { %335 = dma.vmem_to_hbm [thread:$0]  (%p749_p12), %s688_s28, 256, %s693_s20, %s205_s19  }
  0x70 PF: > { %p349_p7 = scmp.ge.s32.totalorder %s512_s12, 2  ;;  %s231_s3 = sand.u32 1, %s500_s9  }
  0x71   : > { %p750_p8 = scmp.ne.s32.totalorder %s742_s22, 0  ;;  %s232_s26 = scalar_lea.sflag [#allocation4], %s231_s3 }
  0x73   : > { %p345_p13 = pnand %p349_p7, %p750_p8 }
  0x75   : > { %495 = dma.done.wait (!%p345_p13), %s232_s26, 256  }
  0x76   : > { %497 = vsyncadd (!%p345_p13), %s232_s26, 4294967040  ;;  %p18_p0 = scmp.ge.s32.totalorder %s557_s15, 5   ;;  %s751_s9 = smov %s504_s10 }
  0x77   : > { %s752_s10 = smov %s508_s11  ;;  %s753_s11 = smov %s569_s18 }
  0x78   : > { %s754_s12 = smov %s557_s15  ;;  %20 = sbr.rel (!%p18_p0) target bundleno = 7 (0x7), region = 86 }
  0x7f   :  { %237 = vsyncpa [#allocation3], 1 }
  0x80   :  { %239 = vsyncpa [#allocation3 + $0x1], 1 }
  0x81   :  { %240 = vsyncpa [#allocation6], 1 }
  0x82   :  { %242 = vsyncpa [#allocation6 + $0x1], 1 }
  0x83   :  { %243 = vsyncpa [#allocation4], 1 }
  0x84   :  { %245 = vsyncpa [#allocation4 + $0x1], 1 }

</bundles_post_ra>
